<compile_context>
chip_gen: v6e
topology: v6e:2x2x1
jax: 0.10.0
libtpu: 0.0.40
codegen_flags: <defaults>
</compile_context>

<pallas_src>
import math
import re
from functools import partial

import jax
import jax.numpy as jnp
from jax.experimental import pallas as pl
from jax.experimental.pallas import tpu as pltpu


def _round_up(v, mult):
    return ((v + mult - 1) // mult) * mult


def _ceil_div(a, b):
    return -(-a // b)


def _tpu_generation():
    """Best-effort TPU generation number (5, 6, 7, ...); 0 if unknown."""
    try:
        kind = jax.devices()[0].device_kind
    except Exception:
        return 0
    m = re.search(r"(\d+)", kind)
    return int(m.group(1)) if m else 0


# ----------------- coefficient preprocessing (tiny, pure JAX, runs once) -----------------

def _fold_low_levels(twiddle, low_log_strides, bs):
    """Fold every level with stride < bs into one dense (bs, bs) factor per stack.

    For a tied-weight butterfly, a level with stride s < bs is block-diagonal with
    *identical* bs x bs blocks, so the composition of all such levels is fully described
    by applying them to eye(bs).  Returns W with y_row = x_row @ W[stack].
    """
    nstack = twiddle.shape[0]
    tw = twiddle.astype(jnp.float32)
    out = jnp.broadcast_to(jnp.eye(bs, dtype=jnp.float32)[:, None, :], (bs, nstack, bs))
    for l in low_log_strides:                       # application order
        s = 1 << l
        t = jnp.transpose(tw[:, s - 1:2 * s - 1], (0, 2, 3, 1))      # (nstack, 2, 2, s)
        orsh = out.reshape(bs, nstack, bs // (2 * s), 1, 2, s)
        out = (t[None, :, None] * orsh).sum(axis=4).reshape(bs, nstack, bs)
    # out[j, st, p] = M_st[p, j]  =>  W_st[j, p] = out[j, st, p]
    return jnp.transpose(out, (1, 0, 2))            # (nstack, bs, bs)


def _level_self_partner(twiddle, l, n):
    """Lane maps A, B ((nstack, n), f32) with y[p] = A[p]*x[p] + B[p]*x[p^s], s = 2^l."""
    s = 1 << l
    p = jnp.arange(n)
    k = p & (s - 1)
    b = (p >> l) & 1
    idx = (s - 1) + k
    A = twiddle[:, idx, b, b].astype(jnp.float32)
    B = twiddle[:, idx, b, 1 - b].astype(jnp.float32)
    return A, B


def _high_level_passes(twiddle, high_log_strides, n):
    """Fuse consecutive high-stride levels pairwise into radix-4 passes.

    Returns (passes, coeffs):
      passes : static tuple of ("single", s) / ("pair", s1, s2) in application order
      coeffs : (nstack, n_rows, n) f32; 2 rows per single pass, 4 rows per pair pass
    """
    passes, rows = [], []
    hs = list(high_log_strides)
    i = 0
    while i < len(hs):
        if i + 1 < len(hs):
            l1, l2 = hs[i], hs[i + 1]               # level l1 applied first, then l2
            s1, s2 = 1 << l1, 1 << l2
            A1, B1 = _level_self_partner(twiddle, l1, n)
            A2, B2 = _level_self_partner(twiddle, l2, n)
            perm = jnp.arange(n) ^ s2               # A1/B1 evaluated at the s2-partner
            rows += [A2 * A1, A2 * B1, B2 * A1[:, perm], B2 * B1[:, perm]]
            passes.append(("pair", s1, s2))
            i += 2
        else:
            l = hs[i]
            A, B = _level_self_partner(twiddle, l, n)
            rows += [A, B]
            passes.append(("single", 1 << l))
            i += 1
    return tuple(passes), jnp.stack(rows, axis=1)   # (nstack, n_rows, n)


# ------------------------------------- kernels -------------------------------------------

def _xor_chunks(x, mask):
    """out[:, p] = x[:, p ^ mask].  mask's lowest set bit >= 128, so this is a lane-aligned
    whole-chunk permutation (pure concatenation of aligned slices; no roll/iota/select)."""
    chunk = mask & (-mask)
    nch = x.shape[-1] // chunk
    m = mask // chunk
    parts = [x[:, (c ^ m) * chunk:((c ^ m) + 1) * chunk] for c in range(nch)]
    return jnp.concatenate(parts, axis=-1)


def _dense_kernel(x_ref, w_ref, o_ref):
    # All butterfly levels folded: one wide bf16 MXU matmul per tile (f32 accumulation),
    # landing directly in the final lane-dense (batch, nstack*n) layout.
    x = x_ref[...].astype(jnp.bfloat16)
    o_ref[...] = jnp.dot(x, w_ref[...],
                         preferred_element_type=jnp.float32).astype(o_ref.dtype)


def _split_kernel(x_ref, w_ref, c_ref, o_ref, *, n, bs, nstack, passes, matmul_first):
    """Low-stride levels as bf16 MXU block-matmuls + high-stride levels as radix-2/4 FMA."""
    nblk = n // bs

    if matmul_first:                                # increasing_stride=True
        x_mm = x_ref[...].astype(jnp.bfloat16)      # single cast, shared by all stacks
    else:                                           # increasing_stride=False
        x_hi = x_ref[...].astype(jnp.float32)

    for st in range(nstack):                        # nstack = ceil(out/n): small, static
        w = w_ref[st]                               # (bs, bs) bf16, VMEM-resident
        c = c_ref[st]                               # (n_rows, n) f32 coefficient rows

        def low_matmul(xb, w=w):
            # strides < bs: identical block-diagonal factor -> aligned slices + bf16 MXU
            ys = [jnp.dot(xb[:, g * bs:(g + 1) * bs], w,
                          preferred_element_type=jnp.float32)
                  for g in range(nblk)]
            return ys[0] if nblk == 1 else jnp.concatenate(ys, axis=-1)

        def high_fma(x, c=c):
            # strides >= bs (>= 128): partners are whole 128-aligned chunks; pairs of
            # levels fused into one radix-4 sweep (half the vst-bound full-tile passes).
            row = 0
            for p in passes:
                if p[0] == "single":
                    s = p[1]
                    a, b = c[row:row + 1, :], c[row + 1:row + 2, :]
                    x = a * x + b * _xor_chunks(x, s)
                    row += 2
                else:
                    _, s1, s2 = p
                    c00 = c[row + 0:row + 1, :]
                    c01 = c[row + 1:row + 2, :]
                    c10 = c[row + 2:row + 3, :]
                    c11 = c[row + 3:row + 4, :]
                    x = (c00 * x + c01 * _xor_chunks(x, s1)
                         + c10 * _xor_chunks(x, s2) + c11 * _xor_chunks(x, s1 ^ s2))
                    row += 4
            return x

        if matmul_first:
            y = high_fma(low_matmul(x_mm))
        else:
            y = low_matmul(high_fma(x_hi).astype(jnp.bfloat16))

        # Per-stack store: n >= 2*bs >= 256 here, so st*n offsets are 128-lane aligned
        # (unmasked vst); avoids an nstack-wide f32 concatenate and its VMEM pressure.
        o_ref[:, st * n:(st + 1) * n] = y.astype(o_ref.dtype)


# ------------------------------------- wrapper -------------------------------------------

def butterfly_linear_forward(x, twiddle, in_size, out_size, *,
                             increasing_stride=True, fold_block=None, batch_tile=None,
                             vmem_tile_budget=None, vmem_limit_bytes=None):
    # ---- generation-aware defaults ----
    gen = _tpu_generation()
    if fold_block is None:
        fold_block = 256 if gen >= 6 else 128       # match the 256x256 MXU on v6e/v7x
    if gen in (5, 6):                               # 128 MiB VMEM chips: big tiles
        batch_tile = 1024 if batch_tile is None else batch_tile
        vmem_tile_budget = 64 << 20 if vmem_tile_budget is None else vmem_tile_budget
        vmem_limit_bytes = 100 << 20 if vmem_limit_bytes is None else vmem_limit_bytes
    else:                                           # v7x (64 MiB VMEM) / unknown: conservative
        batch_tile = 512 if batch_tile is None else batch_tile
        vmem_tile_budget = 28 << 20 if vmem_tile_budget is None else vmem_tile_budget
        vmem_limit_bytes = 48 << 20 if vmem_limit_bytes is None else vmem_limit_bytes

    # ---- pre_process (glue) ----
    lead_shape = x.shape[:-1]
    assert x.shape[-1] == in_size
    xf = x.reshape(-1, in_size)                     # keep original dtype (halves DMA for bf16)
    nstack = twiddle.shape[0]
    n = twiddle.shape[1] + 1                        # in_size_extended (power of two)
    m = int(math.log2(n))
    assert n == (1 << m)
    if in_size != n:                                # zero-pad features to power of two
        xf = jnp.pad(xf, ((0, 0), (0, n - in_size)))
    Bf = xf.shape[0]

    # ---- fold levels with stride < bs into an MXU factor; fuse the rest pairwise ----
    assert fold_block & (fold_block - 1) == 0
    bs = min(n, fold_block)
    kb = int(math.log2(bs))
    low = list(range(kb))
    high = list(range(kb, m))
    if not increasing_stride:
        low, high = low[::-1], high[::-1]
    W = _fold_low_levels(twiddle, low, bs)          # (nstack, bs, bs) f32
    if high:
        passes, coeffs = _high_level_passes(twiddle, high, n)

    # ---- batch tiling: VMEM-budgeted tiles; even >=2 grid steps for multi-tile batches ----
    isize = xf.dtype.itemsize
    bytes_per_row = (2 * n * isize                  # double-buffered input tile
                     + 2 * nstack * n * isize       # double-buffered output tile
                     + 24 * n)                      # f32 upcast / matmul partials / partners
    bt = max(8, min(batch_tile, vmem_tile_budget // bytes_per_row))
    bt = max(8, (bt // 8) * 8)
    if Bf <= bt:
        bt = max(8, _round_up(Bf, 8))
        steps = 1
    else:
        steps = _ceil_div(Bf, bt)
        steps += steps % 2                          # even step count: dual-TC load balance
        bt = max(8, _round_up(_ceil_div(Bf, steps), 8))
        steps = _ceil_div(Bf, bt)
        steps += steps % 2
    Bp = steps * bt
    if Bp != Bf:
        xf = jnp.pad(xf, ((0, Bp - Bf), (0, 0)))

    cparams = pltpu.CompilerParams(dimension_semantics=("parallel",),
                                   vmem_limit_bytes=vmem_limit_bytes)
    out_shape = jax.ShapeDtypeStruct((Bp, nstack * n), x.dtype)
    x_spec = pl.BlockSpec((bt, n), lambda i: (i, 0))
    out_spec = pl.BlockSpec((bt, nstack * n), lambda i: (i, 0))

    if not high:
        # All levels folded: pre-concatenate per-stack factors into one (n, nstack*n) RHS.
        w_wide = jnp.transpose(W, (1, 0, 2)).reshape(n, nstack * n).astype(jnp.bfloat16)
        out = pl.pallas_call(
            _dense_kernel,
            out_shape=out_shape,
            grid_spec=pltpu.PrefetchScalarGridSpec(
                num_scalar_prefetch=0, grid=(steps,),
                in_specs=[x_spec,
                          pl.BlockSpec((n, nstack * n), lambda i: (0, 0))],
                out_specs=out_spec),
            compiler_params=cparams,
        )(xf, w_wide)
    else:
        kernel = partial(_split_kernel, n=n, bs=bs, nstack=nstack,
                         passes=passes, matmul_first=increasing_stride)
        n_rows = coeffs.shape[1]
        out = pl.pallas_call(
            kernel,
            out_shape=out_shape,
            grid_spec=pltpu.PrefetchScalarGridSpec(
                num_scalar_prefetch=0, grid=(steps,),
                in_specs=[x_spec,
                          pl.BlockSpec((nstack, bs, bs), lambda i: (0, 0, 0)),
                          pl.BlockSpec((nstack, n_rows, n), lambda i: (0, 0, 0))],
                out_specs=out_spec),
            compiler_params=cparams,
        )(xf, W.astype(jnp.bfloat16), coeffs)

    # ---- post_process (glue): output already in (batch, nstack*n) layout ----
    out = out[:Bf]
    if out_size != nstack * n:                      # "take top columns"
        out = out[:, :out_size]
    # bias=False in ButterflyLinear -> Butterfly.bias is None -> no bias add
    return out.reshape(*lead_shape, out_size)


# ---- pure-JAX reference (mirror of butterfly_mult_torch, tied weight, real) ----
def butterfly_ref(x, twiddle, in_size, out_size, increasing_stride=True):
    lead = x.shape[:-1]
    xf = x.reshape(-1, in_size).astype(jnp.float32)
    nstack = twiddle.shape[0]
    n = twiddle.shape[1] + 1
    m = int(math.log2(n))
    if in_size != n:
        xf = jnp.pad(xf, ((0, 0), (0, n - in_size)))
    B = xf.shape[0]
    out = jnp.broadcast_to(xf[:, None, :], (B, nstack, n))
    order = range(m) if increasing_stride else range(m - 1, -1, -1)
    tw = twiddle.astype(jnp.float32)
    for l in order:
        s = 1 << l
        t = jnp.transpose(tw[:, s - 1:2 * s - 1], (0, 2, 3, 1))      # (nstack,2,2,s)
        orsh = out.reshape(B, nstack, n // (2 * s), 1, 2, s)
        out = (t[None, :, None] * orsh).sum(axis=4).reshape(B, nstack, n)
    out = out.reshape(B, nstack * n)
    if out_size != nstack * n:
        out = out[:, :out_size]
    return out.reshape(*lead, out_size)


if __name__ == "__main__":
    key = jax.random.PRNGKey(0)

    def run_case(k, in_size, out_size, lead, increasing_stride=True, **kw):
        n = 1 << int(math.ceil(math.log2(in_size)))
        nstack = int(math.ceil(out_size / n))
        k1, k2 = jax.random.split(k)
        # Butterfly init (tied, real, ortho_init=False): randn/sqrt(2), shape (nstack, n-1, 2, 2)
        twiddle = jax.random.normal(k1, (nstack, n - 1, 2, 2), jnp.float32) / math.sqrt(2.0)
        x = jax.random.normal(k2, (*lead, in_size), jnp.float32)
        y = jax.block_until_ready(
            butterfly_linear_forward(x, twiddle, in_size, out_size,
                                     increasing_stride=increasing_stride, **kw))
        y_ref = butterfly_ref(x, twiddle, in_size, out_size, increasing_stride)
        assert y.shape == (*lead, out_size)
        err = float(jnp.max(jnp.abs(y - y_ref)))
        # bf16 MXU inputs with f32 accumulation -> looser tolerance than pure-f32
        assert jnp.allclose(y, y_ref, atol=3e-2, rtol=3e-2), err

    # TODO(synk): complex=True and tied_weight=False Butterfly variants are not implemented
    # (ButterflyLinear defaults are complex=False, tied_weight=True).
    keys = jax.random.split(key, 7)
    run_case(keys[0], 32, 32, (2, 8))                    # n=32: single wide MXU matmul, nstack=1
    run_case(keys[1], 48, 100, (3, 5))                   # pad in->64, nstack=2, out slice to 100
    run_case(keys[2], 200, 200, (4,))                    # n=256 (folded or 1 high level per gen)
    run_case(keys[3], 200, 200, (4,), increasing_stride=False)
    # force the split (matmul + high-stride) path regardless of TPU generation:
    run_case(keys[4], 512, 512, (16,), fold_block=128)   # one fused radix-4 pair pass
    run_case(keys[5], 1024, 1024, (8,), fold_block=128,  # pair pass + leftover single pass
             increasing_stride=False)
    run_case(keys[6], 64, 64, (40,), batch_tile=16)      # multi-(even)-step grid over batch
    print("KERNEL_OK")
</pallas_src>

<mosaic_0001>
module attributes {stable_mosaic.version = 11 : i64} {
  func.func @_dense_kernel(%arg0: i32, %arg1: memref<16x32xf32, #tpu.memory_space<vmem>>, %arg2: memref<32x32xbf16, #tpu.memory_space<vmem>>, %arg3: memref<16x32xf32, #tpu.memory_space<vmem>>) attributes {dimension_semantics = [#tpu.dimension_semantics<parallel>], iteration_bounds = array<i64: 1>, scalar_prefetch = 0 : i64, scratch_operands = 0 : i64, tpu.core_type = #tpu.core_type<tc>, window_params = [{transform_indices = @transform_0, window_bounds = array<i64: 16, 32>}, {pipeline_mode = #tpu.pipeline_mode<synchronous>, transform_indices = @transform_1, window_bounds = array<i64: 32, 32>}, {transform_indices = @transform_2, window_bounds = array<i64: 16, 32>}]} {
    %c0 = arith.constant 0 : index
    %c0_0 = arith.constant 0 : index
    %0 = vector.load %arg1[%c0, %c0_0] : memref<16x32xf32, #tpu.memory_space<vmem>>, vector<16x32xf32>
    %1 = arith.truncf %0 : vector<16x32xf32> to vector<16x32xbf16>
    %c0_1 = arith.constant 0 : index
    %c0_2 = arith.constant 0 : index
    %2 = vector.load %arg2[%c0_1, %c0_2] : memref<32x32xbf16, #tpu.memory_space<vmem>>, vector<32x32xbf16>
    %cst = arith.constant dense<0.000000e+00> : vector<16x32xf32>
    %3 = tpu.matmul %1, %2, %cst {dimension_numbers = #tpu.dot_dimension_numbers<[1], [0], [0], [1], [0, 0, 1, 1], [], []>} : vector<16x32xbf16>, vector<32x32xbf16>, vector<16x32xf32> -> vector<16x32xf32>
    %c0_3 = arith.constant 0 : index
    %c0_4 = arith.constant 0 : index
    %4 = vector.load %arg3[%c0_3, %c0_4] : memref<16x32xf32, #tpu.memory_space<vmem>>, vector<16x32xf32>
    tpu.vector_store %arg3[%c0_3, %c0_4], %3 {strides = array<i32>} : memref<16x32xf32, #tpu.memory_space<vmem>>, vector<16x32xf32>,
    return
  }
  func.func @transform_0(%arg0: i32) -> (i32, i32) {
    %c0_i32 = arith.constant 0 : i32
    %c0_i32_0 = arith.constant 0 : i32
    return %arg0, %c0_i32 : i32, i32
  }
  func.func @transform_1(%arg0: i32) -> (i32, i32) {
    %c0_i32 = arith.constant 0 : i32
    %c0_i32_0 = arith.constant 0 : i32
    %c0_i32_1 = arith.constant 0 : i32
    return %c0_i32, %c0_i32_0 : i32, i32
  }
  func.func @transform_2(%arg0: i32) -> (i32, i32) {
    %c0_i32 = arith.constant 0 : i32
    %c0_i32_0 = arith.constant 0 : i32
    return %arg0, %c0_i32 : i32, i32
  }
}

</mosaic_0001>

<bundles_post_ra>
// kernel: tpu_custom_call.1
= control target key start
LH: loop header
LB: loop body
LE: loop exit
PB: predicated region body
PF: predicated region fallthrough
CT: control target
= control target key end

     0   :  { %7 = vsyncpa [#allocation3], 0  ;;  %s255_s0 = inlined_call_operand.hbm [shape: f32[16,32], index: 0, kind: input, shape index: {}]   ;;  %s256_s1 = inlined_call_operand.hbm [shape: bf16[32,32], index: 1, kind: input, shape index: {}]   ;;  %s257_s2 = inlined_call_operand.hbm [shape: f32[16,32], index: 2, kind: output, shape index: {}]  }
   0x1   :  { %8 = vsyncpa [#allocation6], 0 }
   0x2   :  { %9 = vsyncpa [#allocation4], 0  ;;  %s216_s9 = smov [#allocation2]  }
   0x3   :  { %s15_s10 = sshll.u32 %s216_s9, 4  ;;  %s16_s10 = int_to_ptr.vmem [resolvable:$true] %s15_s10 }
   0x4   :  { %s158_s11 = scalar_lea.vmem %s16_s10, 256  ;;  %p163_p1 = scmp.lt.s32.totalorder %s16_s10, %s16_s10 }
   0x5   :  { %p159_p0 = scmp.ne.s32.totalorder %s16_s10, %s158_s11  ;;  %p164_p2 = scmp.lt.s32.totalorder %s158_s11, %s158_s11 }
   0x7   :  { %p165_p3 = por %p164_p2, %p163_p1 }
   0x9   :  { %p166_p4 = pnand %p165_p3, %p159_p0 }
   0xb   :  { %169 = shalt.err (!%p166_p4)
}
   0xc   :  { %s217_s12 = smov 128   ;;  %s218_s13 = smov 8  }
   0xd   :  { %21 = dma.hbm_to_vmem [thread:$0]  %s255_s0, 256, %s16_s10, [#allocation3], %s217_s12, %s217_s12, %s218_s13  }
   0xe   :  { %s219_s16 = smov [#allocation5]  }
   0xf   :  { %s27_s17 = sshll.u32 %s219_s16, 4  ;;  %s28_s17 = int_to_ptr.vmem [resolvable:$true] %s27_s17 }
  0x10   :  { %s178_s18 = scalar_lea.vmem %s28_s17, 256  ;;  %p183_p6 = scmp.lt.s32.totalorder %s28_s17, %s28_s17 }
  0x11   :  { %p179_p5 = scmp.ne.s32.totalorder %s28_s17, %s178_s18  ;;  %p184_p7 = scmp.lt.s32.totalorder %s178_s18, %s178_s18 }
  0x13   :  { %p185_p8 = por %p184_p7, %p183_p6 }
  0x15   :  { %p186_p9 = pnand %p185_p8, %p179_p5 }
  0x17   :  { %189 = shalt.err (!%p186_p9)
}
  0x18   :  { %s220_s19 = smov 64   ;;  %s221_s20 = smov 4  }
  0x19   :  { %33 = dma.hbm_to_vmem [thread:$0]  %s256_s1, 256, %s28_s17, [#allocation6], %s220_s19, %s220_s19, %s221_s20  }
  0x1a   :  { %210 = dma.done.wait [#allocation3], 256  }
  0x1b   :  { %211 = vsyncadd [#allocation3], 4294967040 }
  0x1c   :  { %212 = dma.done.wait [#allocation6], 256  }
  0x1d   :  { %213 = vsyncadd [#allocation6], 4294967040  ;;  %v222_v0 = vmov 0.0   ;;  %vm223_vm0 = vmmov 0   ;;  %v148_v1 = vld [vmem:[#allocation5 + $0x8] sm:$0xff]   ;;  %v149_v2 = vld [vmem:[#allocation5] sm:$0xff]  }
  0x1e   :  { %131 = vmatprep.subr.bf16.mxu0 %v222_v0  ;;  %135 = vmatprep.mubr.msk.bf16.mxu0 %vm223_vm0, %v222_v0  ;;  %v41_v3 = vld [vmem:[#allocation2] sm:$0xff]  ;;  %v42_v4 = vld [vmem:[#allocation2 + $0x8] sm:$0xff]  ;;  %vm60_vm1 = vcmask 261120   ;;  %s224_s0 = smov [#allocation7]  }
  0x1f   :  { %132 = vmatpush3.bf16.msra.mxu0 %v148_v1  ;;  %v43_v5 = vpack.c.bf16 %v42_v4, %v41_v3  ;;  %s112_s1 = sshll.u32 %s224_s0, 4  ;;  %s113_s1 = int_to_ptr.vmem [resolvable:$true] %s112_s1 }
  0x20   :  { %133 = vmatprep.subr.bf16.mxu0 %v222_v0  ;;  %s190_s23 = scalar_lea.vmem %s113_s1, 256  ;;  %p195_p11 = scmp.lt.s32.totalorder %s113_s1, %s113_s1 }
  0x21   :  { %p191_p10 = scmp.ne.s32.totalorder %s113_s1, %s190_s23  ;;  %p196_p12 = scmp.lt.s32.totalorder %s190_s23, %s190_s23 }
  0x23   :  { %134 = vmatpush3.bf16.msra.mxu0 %v149_v2  ;;  %p197_p13 = por %p196_p12, %p195_p11 }
  0x25   :  { %p198_p0 = pnand %p197_p13, %p191_p10 }
  0x26   :  { %136 = vmatmul.mubr.msk.bf16.vlgmr.msra.gmra.mxu0 %vm60_vm1, %v43_v5 }
  0xe6   :  { %v98_v6 = vpop.f32.mrf.mxu0 }
  0xe7   :  { %105 = vst.msk [vmem:[#allocation7] sm:$0xff] %vm60_vm1, %v98_v6 }
  0xe8   :  { %v137_v7 = vpop.f32.mrf.mxu0 }
  0xea   :  { %v101_v8 = vpop.f32.mrf.mxu0 }
  0xeb   :  { %106 = vst.msk [vmem:[#allocation7 + $0x8] sm:$0xff] %vm60_vm1, %v101_v8 }
  0xec   :  { %v138_v9 = vpop.f32.mrf.mxu0 }
  0xed   :  { %201 = shalt.err (!%p198_p0)
}
  0xee   :  { %118 = dma.vmem_to_hbm [thread:$0]  %s113_s1, 256, %s257_s2, [#allocation4], %s217_s12, %s217_s12, %s218_s13  }
  0xef   :  { %214 = dma.done.wait [#allocation4], 256  }
  0xf0   :  { %215 = vsyncadd [#allocation4], 4294967040 }
  0xf1   :  { %122 = vsyncpa [#allocation3], 1 }
  0xf2   :  { %123 = vsyncpa [#allocation6], 1 }
  0xf3   :  { %124 = vsyncpa [#allocation4], 1 }

</bundles_post_ra>
